<compile_context>
chip_gen: v5e
topology: v5e:2x2
jax: 0.10.0
libtpu: 0.0.40
codegen_flags: <defaults>
</compile_context>

<pallas_src>
import jax
import jax.numpy as jnp
from jax import lax
from jax.experimental import pallas as pl
from jax.experimental.pallas import tpu as pltpu


def _club_categorical_kernel(x_ref, lab_ref, cntn_ref,
                             w1_ref, b1_ref, w2_ref, b2_ref, out_ref):
    # ---- varnet: Linear -> ReLU -> Linear (bf16 MXU inputs, f32 accum) ----
    h = jnp.dot(x_ref[...], w1_ref[...], preferred_element_type=jnp.float32)
    h = jnp.maximum(h + b1_ref[...], 0.0)                               # (TM, H) f32
    logits = jnp.dot(h.astype(jnp.bfloat16), w2_ref[...],
                     preferred_element_type=jnp.float32) + b2_ref[...]  # (TM, Dy) f32

    # ---- positive - negative, with the exact lse cancellation ----------
    #   out[i] = sum_c logits[i, c] * (onehot(label[i])[c] - count[c]/N)
    tm, dy = logits.shape
    iota = lax.broadcasted_iota(jnp.int32, (tm, dy), 1)
    onehot = (iota == lab_ref[...]).astype(jnp.float32)                 # (TM, Dy)
    weight = onehot - cntn_ref[...]                                     # (TM,Dy)-(1,Dy)
    res = jnp.sum(logits * weight, axis=-1)                             # (TM,)
    out_ref[...] = res[None, :]                                         # (1, TM) lane-dense


def club_categorical_forward(x_samples, y_samples, params, *, tm=512):
    """x_samples: [N, x_dim] f32; y_samples: [N, y_dim] one-hot f32. Returns [N] f32."""
    w1, b1, w2, b2 = params
    n, dx = x_samples.shape
    dy = y_samples.shape[1]
    hidden = w1.shape[1]

    # Row tile: large (amortizes per-step overhead, fills 256-wide MXU M dim),
    # but capped so the parallel grid keeps >= 2 tiles (both v7x TensorCores
    # used, no gross over-padding) and is always a multiple of 128.
    tm = min(tm, 128 * max(1, pl.cdiv(n, 2 * 128)))
    tm = max(128, (tm // 128) * 128)

    # Batch-wide precompute (the only cross-tile dependency):
    #   int labels + count[c]/N via a vectorized column reduce (no scatter-add).
    labels = jnp.argmax(y_samples, axis=-1).astype(jnp.int32)            # (N,)
    counts = jnp.sum(jax.nn.one_hot(labels, dy, dtype=jnp.float32), axis=0)
    cnt_over_n = (counts / jnp.float32(n)).reshape(1, dy)

    # Pad the batch to a multiple of TM; padded rows are sliced off below.
    num_tiles = pl.cdiv(n, tm)
    n_pad = num_tiles * tm
    # Cast to bf16 *before* padding so the pad copy moves half the bytes.
    x_bf = jnp.pad(x_samples.astype(jnp.bfloat16), ((0, n_pad - n), (0, 0)))
    lab_p = jnp.pad(labels, (0, n_pad - n)).reshape(n_pad, 1)

    w1_bf = w1.astype(jnp.bfloat16)
    w2_bf = w2.astype(jnp.bfloat16)
    b1_2d = b1.reshape(1, hidden).astype(jnp.float32)
    b2_2d = b2.reshape(1, dy).astype(jnp.float32)

    resident = lambda i: (0, 0)   # weights / biases / counts stay put in VMEM
    out = pl.pallas_call(
        _club_categorical_kernel,
        out_shape=jax.ShapeDtypeStruct((1, n_pad), jnp.float32),
        grid=(num_tiles,),
        in_specs=[
            pl.BlockSpec((tm, dx), lambda i: (i, 0)),      # x row tile (bf16)
            pl.BlockSpec((tm, 1), lambda i: (i, 0)),       # int32 labels tile
            pl.BlockSpec((1, dy), resident),               # counts / N
            pl.BlockSpec((dx, hidden), resident),          # W1
            pl.BlockSpec((1, hidden), resident),           # b1
            pl.BlockSpec((hidden, dy), resident),          # W2
            pl.BlockSpec((1, dy), resident),               # b2
        ],
        out_specs=pl.BlockSpec((1, tm), lambda i: (0, i)),
        compiler_params=pltpu.CompilerParams(
            dimension_semantics=("parallel",),
            vmem_limit_bytes=32 * 1024 * 1024),
    )(x_bf, lab_p, cnt_over_n, w1_bf, b1_2d, w2_bf, b2_2d)

    return out.reshape(-1)[:n]


def init_params(key, x_dim, y_dim, hidden_size):
    """Deterministic PyTorch-style Linear init: U(-1/sqrt(fan_in), 1/sqrt(fan_in))."""
    k1, k2, k3, k4 = jax.random.split(key, 4)
    s1 = 1.0 / (x_dim ** 0.5)
    s2 = 1.0 / (hidden_size ** 0.5)
    w1 = jax.random.uniform(k1, (x_dim, hidden_size), jnp.float32, -s1, s1)
    b1 = jax.random.uniform(k2, (hidden_size,), jnp.float32, -s1, s1)
    w2 = jax.random.uniform(k3, (hidden_size, y_dim), jnp.float32, -s2, s2)
    b2 = jax.random.uniform(k4, (y_dim,), jnp.float32, -s2, s2)
    return (w1, b1, w2, b2)


def _reference(x, y, params):
    """Pure-JAX reference mirroring the PyTorch forward (same bf16 matmul precision)."""
    w1, b1, w2, b2 = params
    h = jnp.maximum(
        jnp.dot(x.astype(jnp.bfloat16), w1.astype(jnp.bfloat16),
                preferred_element_type=jnp.float32) + b1, 0.0)
    logits = jnp.dot(h.astype(jnp.bfloat16), w2.astype(jnp.bfloat16),
                     preferred_element_type=jnp.float32) + b2
    lsm = jax.nn.log_softmax(logits, axis=-1)
    labels = jnp.argmax(y, axis=-1)
    log_mat = lsm[:, labels]            # (N, N): log_mat[i, j] = lsm[i, label[j]]
    positive = jnp.diag(log_mat)
    negative = jnp.mean(log_mat, axis=1)
    return positive - negative


if __name__ == "__main__":
    # Small but TPU-friendly shapes: H and Dy lane-aligned (128); N=200
    # exercises the row-padding path and a 2-step parallel grid (TM auto-caps
    # to 128 here so both v7x TensorCores get a tile).
    N, X_DIM, Y_DIM, HIDDEN = 200, 64, 128, 128

    key = jax.random.PRNGKey(0)
    k_x, k_y, k_p = jax.random.split(key, 3)

    x_samples = jax.random.normal(k_x, (N, X_DIM), jnp.float32)
    labels = jax.random.randint(k_y, (N,), 0, Y_DIM)
    y_samples = jax.nn.one_hot(labels, Y_DIM, dtype=jnp.float32)

    params = init_params(k_p, X_DIM, Y_DIM, HIDDEN)

    out = club_categorical_forward(x_samples, y_samples, params)
    out = jax.block_until_ready(out)

    ref = _reference(x_samples, y_samples, params)
    assert out.shape == (N,)
    assert jnp.allclose(out, ref, atol=2e-3, rtol=2e-3), (out, ref)

    print("KERNEL_OK")
</pallas_src>

<mosaic_0001>
module attributes {stable_mosaic.version = 11 : i64} {
  func.func @_club_categorical_kernel(%arg0: i32, %arg1: memref<128x64xbf16, #tpu.memory_space<vmem>>, %arg2: memref<128x1xi32, #tpu.memory_space<vmem>>, %arg3: memref<1x128xf32, #tpu.memory_space<vmem>>, %arg4: memref<64x128xbf16, #tpu.memory_space<vmem>>, %arg5: memref<1x128xf32, #tpu.memory_space<vmem>>, %arg6: memref<128x128xbf16, #tpu.memory_space<vmem>>, %arg7: memref<1x128xf32, #tpu.memory_space<vmem>>, %arg8: memref<1x128xf32, #tpu.memory_space<vmem>>) attributes {dimension_semantics = [#tpu.dimension_semantics<parallel>], iteration_bounds = array<i64: 2>, scalar_prefetch = 0 : i64, scratch_operands = 0 : i64, tpu.core_type = #tpu.core_type<tc>, window_params = [{transform_indices = @transform_0, window_bounds = array<i64: 128, 64>}, {transform_indices = @transform_1, window_bounds = array<i64: 128, 1>}, {pipeline_mode = #tpu.pipeline_mode<synchronous>, transform_indices = @transform_2, window_bounds = array<i64: 1, 128>}, {pipeline_mode = #tpu.pipeline_mode<synchronous>, transform_indices = @transform_3, window_bounds = array<i64: 64, 128>}, {pipeline_mode = #tpu.pipeline_mode<synchronous>, transform_indices = @transform_4, window_bounds = array<i64: 1, 128>}, {pipeline_mode = #tpu.pipeline_mode<synchronous>, transform_indices = @transform_5, window_bounds = array<i64: 128, 128>}, {pipeline_mode = #tpu.pipeline_mode<synchronous>, transform_indices = @transform_6, window_bounds = array<i64: 1, 128>}, {transform_indices = @transform_7, window_bounds = array<i64: 1, 128>}]} {
    %c0 = arith.constant 0 : index
    %c0_0 = arith.constant 0 : index
    %0 = vector.load %arg1[%c0, %c0_0] : memref<128x64xbf16, #tpu.memory_space<vmem>>, vector<128x64xbf16>
    %c0_1 = arith.constant 0 : index
    %c0_2 = arith.constant 0 : index
    %1 = vector.load %arg4[%c0_1, %c0_2] : memref<64x128xbf16, #tpu.memory_space<vmem>>, vector<64x128xbf16>
    %cst = arith.constant dense<0.000000e+00> : vector<128x128xf32>
    %2 = tpu.matmul %0, %1, %cst {dimension_numbers = #tpu.dot_dimension_numbers<[1], [0], [0], [1], [0, 0, 1, 1], [], []>} : vector<128x64xbf16>, vector<64x128xbf16>, vector<128x128xf32> -> vector<128x128xf32>
    %c0_3 = arith.constant 0 : index
    %c0_4 = arith.constant 0 : index
    %3 = vector.load %arg5[%c0_3, %c0_4] : memref<1x128xf32, #tpu.memory_space<vmem>>, vector<1x128xf32>
    %4 = vector.broadcast %3 : vector<1x128xf32> to vector<128x128xf32>
    %5 = arith.addf %2, %4 : vector<128x128xf32>
    %cst_5 = arith.constant 0.000000e+00 : f32
    %6 = vector.broadcast %cst_5 : f32 to vector<128x128xf32>
    %7 = arith.maximumf %5, %6 : vector<128x128xf32>
    %8 = arith.truncf %7 : vector<128x128xf32> to vector<128x128xbf16>
    %c0_6 = arith.constant 0 : index
    %c0_7 = arith.constant 0 : index
    %9 = vector.load %arg6[%c0_6, %c0_7] : memref<128x128xbf16, #tpu.memory_space<vmem>>, vector<128x128xbf16>
    %cst_8 = arith.constant dense<0.000000e+00> : vector<128x128xf32>
    %10 = tpu.matmul %8, %9, %cst_8 {dimension_numbers = #tpu.dot_dimension_numbers<[1], [0], [0], [1], [0, 0, 1, 1], [], []>} : vector<128x128xbf16>, vector<128x128xbf16>, vector<128x128xf32> -> vector<128x128xf32>
    %c0_9 = arith.constant 0 : index
    %c0_10 = arith.constant 0 : index
    %11 = vector.load %arg7[%c0_9, %c0_10] : memref<1x128xf32, #tpu.memory_space<vmem>>, vector<1x128xf32>
    %12 = vector.broadcast %11 : vector<1x128xf32> to vector<128x128xf32>
    %13 = arith.addf %10, %12 : vector<128x128xf32>
    %14 = tpu.iota {dimensions = array<i32: 1>} : vector<128x128xi32>
    %c0_11 = arith.constant 0 : index
    %c0_12 = arith.constant 0 : index
    %15 = vector.load %arg2[%c0_11, %c0_12] : memref<128x1xi32, #tpu.memory_space<vmem>>, vector<128x1xi32>
    %16 = vector.broadcast %15 : vector<128x1xi32> to vector<128x128xi32>
    %17 = arith.cmpi eq, %14, %16 : vector<128x128xi32>
    %18 = arith.extui %17 : vector<128x128xi1> to vector<128x128xi32>
    %19 = arith.sitofp %18 : vector<128x128xi32> to vector<128x128xf32>
    %c0_13 = arith.constant 0 : index
    %c0_14 = arith.constant 0 : index
    %20 = vector.load %arg3[%c0_13, %c0_14] : memref<1x128xf32, #tpu.memory_space<vmem>>, vector<1x128xf32>
    %21 = vector.broadcast %20 : vector<1x128xf32> to vector<128x128xf32>
    %22 = arith.subf %19, %21 : vector<128x128xf32>
    %23 = arith.mulf %13, %22 : vector<128x128xf32>
    %cst_15 = arith.constant dense<0.000000e+00> : vector<128xf32>
    %24 = vector.multi_reduction <add>, %23, %cst_15 [1] : vector<128x128xf32> to vector<128xf32>
    %25 = vector.shape_cast %24 : vector<128xf32> to vector<1x128xf32>
    %c0_16 = arith.constant 0 : index
    %c0_17 = arith.constant 0 : index
    %26 = vector.load %arg8[%c0_16, %c0_17] : memref<1x128xf32, #tpu.memory_space<vmem>>, vector<1x128xf32>
    tpu.vector_store %arg8[%c0_16, %c0_17], %25 {strides = array<i32>} : memref<1x128xf32, #tpu.memory_space<vmem>>, vector<1x128xf32>,
    return
  }
  func.func @transform_0(%arg0: i32) -> (i32, i32) {
    %c0_i32 = arith.constant 0 : i32
    %c0_i32_0 = arith.constant 0 : i32
    return %arg0, %c0_i32 : i32, i32
  }
  func.func @transform_1(%arg0: i32) -> (i32, i32) {
    %c0_i32 = arith.constant 0 : i32
    %c0_i32_0 = arith.constant 0 : i32
    return %arg0, %c0_i32 : i32, i32
  }
  func.func @transform_2(%arg0: i32) -> (i32, i32) {
    %c0_i32 = arith.constant 0 : i32
    %c0_i32_0 = arith.constant 0 : i32
    %c0_i32_1 = arith.constant 0 : i32
    return %c0_i32, %c0_i32_0 : i32, i32
  }
  func.func @transform_3(%arg0: i32) -> (i32, i32) {
    %c0_i32 = arith.constant 0 : i32
    %c0_i32_0 = arith.constant 0 : i32
    %c0_i32_1 = arith.constant 0 : i32
    return %c0_i32, %c0_i32_0 : i32, i32
  }
  func.func @transform_4(%arg0: i32) -> (i32, i32) {
    %c0_i32 = arith.constant 0 : i32
    %c0_i32_0 = arith.constant 0 : i32
    %c0_i32_1 = arith.constant 0 : i32
    return %c0_i32, %c0_i32_0 : i32, i32
  }
  func.func @transform_5(%arg0: i32) -> (i32, i32) {
    %c0_i32 = arith.constant 0 : i32
    %c0_i32_0 = arith.constant 0 : i32
    %c0_i32_1 = arith.constant 0 : i32
    return %c0_i32, %c0_i32_0 : i32, i32
  }
  func.func @transform_6(%arg0: i32) -> (i32, i32) {
    %c0_i32 = arith.constant 0 : i32
    %c0_i32_0 = arith.constant 0 : i32
    %c0_i32_1 = arith.constant 0 : i32
    return %c0_i32, %c0_i32_0 : i32, i32
  }
  func.func @transform_7(%arg0: i32) -> (i32, i32) {
    %c0_i32 = arith.constant 0 : i32
    %c0_i32_0 = arith.constant 0 : i32
    return %c0_i32, %arg0 : i32, i32
  }
}

</mosaic_0001>

<bundles_post_ra>
// kernel: tpu_custom_call.1
= control target key start
LH: loop header
LB: loop body
LE: loop exit
PB: predicated region body
PF: predicated region fallthrough
CT: control target
= control target key end

     0   :  { %12 = vsyncpa [#allocation3], 0  ;;  %s1518_s0 = inlined_call_operand.vmem [shape: bf16[256,64], index: 0, kind: input, shape index: {}]   ;;  %s1519_s1 = inlined_call_operand.vmem [shape: s32[256,1], index: 1, kind: input, shape index: {}]   ;;  %s1520_s2 = inlined_call_operand.vmem [shape: f32[1,128], index: 2, kind: input, shape index: {}]   ;;  %s1521_s3 = inlined_call_operand.vmem [shape: bf16[64,128], index: 3, kind: input, shape index: {}]   ;;  %s1522_s4 = inlined_call_operand.vmem [shape: f32[1,128], index: 4, kind: input, shape index: {}]   ;;  %s1523_s5 = inlined_call_operand.vmem [shape: bf16[128,128], index: 5, kind: input, shape index: {}]   ;;  %s1524_s6 = inlined_call_operand.vmem [shape: f32[1,128], index: 6, kind: input, shape index: {}]   ;;  %s1525_s7 = inlined_call_operand.hbm [shape: f32[1,256], index: 7, kind: output, shape index: {}]  }
   0x1   :  { %14 = vsyncpa [#allocation3 + $0x1], 0  ;;  %s1248_s24 = smov 0   ;;  %s1250_s25 = smov 0  }
   0x2   :  { %s1252_s26 = smov 0   ;;  %s1254_s27 = smov 0  }
   0x3 LB: > { %s1269_s28 = sadd.s32 4294967295, %s1204_s27   ;;  %s949_s29 = sadd.s32 4294967294, %s1204_s27   ;;  %s1204_s27 = sphi %s1254_s27, %s1531_s27   ;;  %s1200_s26 = sphi %s1252_s26, %s1530_s26   ;;  %s1196_s25 = sphi %s1250_s25, %s1529_s25   ;;  %s1192_s24 = sphi %s1248_s24, %s1528_s24  }
   0x4   : > { %s1273_s30 = sadd.s32 1, %s1204_s27   ;;  %s184_s8 = sadd.s32 1, %s1200_s26 }
   0x5   : > { %s181_s9 = ssub.s32 %s1204_s27, %s1273_s30  ;;  %p194_p0 = scmp.ne.s32.totalorder %s1200_s26, %s1196_s25 }
   0x6   : > { %p182_p1 = scmp.eq.s32.totalorder %s181_s9, 0  ;;  %p195_p2 = scmp.eq.s32.totalorder %s1269_s28, 1 }
   0x7   : > { %p200_p3 = scmp.ne.s32.totalorder %s1196_s25, %s1192_s24  ;;  %p201_p4 = scmp.eq.s32.totalorder %s949_s29, 1 }
   0x8   : > { %s1284_s10 = scalar_select %p182_p1, %s1200_s26, %s184_s8  }
   0x9   : > { %p1286_p5 = por %p195_p2, %p194_p0  ;;  %p1290_p6 = por %p201_p4, %p200_p3 }
   0xa   : > { %p952_p7 = scmp.ge.s32.totalorder %s1204_s27, 1  ;;  %p252_p8 = scmp.lt.s32.totalorder %s1204_s27, 3 }
   0xc   : > { %p253_p9 = pnand %p952_p7, %p252_p8 }
   0xd   : > { %s953_s15 = sshll.u32 (!%p253_p9), %s1269_s28, 4  ;;  %s286_s9 = sand.u32 (!%p253_p9), 1, %s1196_s25  }
   0xe   : > { %256 = sbr.rel (%p253_p9) target bundleno = 553 (0x229), region = 48  ;;  %p289_p10 = scmp.lt.s32.totalorder (!%p253_p9), %s953_s15, 31 }
   0xf   : > { %s878_s14 = scalar_lea.hbm (!%p253_p9), %s1525_s7, %s1269_s28  ;;  %s870_s28 = scalar_lea.sflag (!%p253_p9), [#allocation3], %s286_s9 }
  0x10   : > { %s882_s18 = sshll.u32 (!%p253_p9), %s878_s14, 4  ;;  %s1162_s22 = scalar_lea.hbm (!%p253_p9), %s1525_s7, 2  ;;  %s883_s18 = int_to_ptr.hbm [resolvable:$true] %s882_s18 }
  0x13   : > { %v1074_v0 = vld [vmem:[%s1521_s3 + $0x18] sm:$0xff]  ;;  %v1073_v1 = vld [vmem:[%s1521_s3 + $0x10] sm:$0xff]  ;;  %s1533_s15 = smov (!%p289_p10, %s953_s15), 31  ;;  %v1072_v2 = vld [vmem:[%s1521_s3 + $0x8] sm:$0xff]  ;;  %vm393_vm0 = vcmask 523264   ;;  %v1206_v21 = vmov 0  }
  0x14   : > { %422 = vmatpush.bf16.msra.mxu0 %v1074_v0  ;;  %1083 = vmatpush.bf16.msra.mxu3 %v1074_v0  ;;  %s954_s20 = sshll.u32 %s1533_s15, 2  ;;  %v1071_v3 = vld [vmem:[%s1521_s3] sm:$0xff]  ;;  %v1082_v8 = vld [vmem:[%s1523_s5 + $0x38] sm:$0xff]  ;;  %v1081_v9 = vld [vmem:[%s1523_s5 + $0x30] sm:$0xff]  ;;  %s956_s16 = sshll.u32 %s1533_s15, 3 }
  0x15   : > { %s292_s8 = scalar_lea.vmem %s1518_s0, %s954_s20  ;;  %559 = vmatpush.bf16.msra.mxu1 %v1082_v8  ;;  %1087 = vmatpush.bf16.msra.mxu2 %v1082_v8  ;;  %v1080_v10 = vld [vmem:[%s1523_s5 + $0x28] sm:$0xff]  ;;  %v1079_v12 = vld [vmem:[%s1523_s5 + $0x20] sm:$0xff]  ;;  %v1078_v16 = vld [vmem:[%s1523_s5 + $0x18] sm:$0xff]  ;;  %s1351_s19 = scalar_lea.vmem %s1519_s1, %s956_s16 }
  0x16   : > { %v1063_v4 = vld [vmem:[%s292_s8] sm:$0xff]  ;;  %v1064_v5 = vld [vmem:[%s292_s8 + $0x8] sm:$0xff]  ;;  %v1065_v6 = vld [vmem:[%s292_s8 + $0x10] sm:$0xff]  ;;  %1136 = vset.pattern.permute.xlu0 %v1206_v21  ;;  %1137 = vset.pattern.permute.xlu1 %v1206_v21  ;;  %s287_s16 = scalar_lea.vmem [#allocation2], %s286_s9 }
  0x17   : > { %v1068_v7 = vld [vmem:[%s292_s8 + $0x28] sm:$0xff]  ;;  %v1066_v11 = vld [vmem:[%s292_s8 + $0x18] sm:$0xff]  ;;  %v1069_v13 = vld [vmem:[%s292_s8 + $0x30] sm:$0xff]  ;;  %1138 = vset.pattern.permute.xlu2 %v1206_v21  ;;  %s880_s17 = sshll.u32 %s287_s16, 4  ;;  %s881_s17 = int_to_ptr.vmem [resolvable:$true] %s880_s17 }
  0x18   : > { %423 = vmatpush.bf16.msra.mxu0 %v1073_v1  ;;  %1084 = vmatpush.bf16.msra.mxu3 %v1073_v1  ;;  %v1067_v14 = vld [vmem:[%s292_s8 + $0x20] sm:$0xff]  ;;  %v1070_v15 = vld [vmem:[%s292_s8 + $0x38] sm:$0xff]  ;;  %v1077_v17 = vld [vmem:[%s1523_s5 + $0x10] sm:$0xff] }
  0x19   : > { %560 = vmatpush.bf16.msra.mxu1 %v1081_v9  ;;  %1088 = vmatpush.bf16.msra.mxu2 %v1081_v9  ;;  %v1076_v18 = vld [vmem:[%s1523_s5 + $0x8] sm:$0xff]  ;;  %v1075_v19 = vld [vmem:[%s1523_s5] sm:$0xff]  ;;  %v612_v25 = vld [vmem:[%s1351_s19 + $0x10] sm:$0xff] }
  0x1a   : > { %v610_v20 = vld [vmem:[%s1351_s19] sm:$0xff]  ;;  %v611_v22 = vld [vmem:[%s1351_s19 + $0x8] sm:$0xff]  ;;  %633 = vperm.xlu1 %1137, %v612_v25   ;;  %v613_v32 = vld [vmem:[%s1351_s19 + $0x18] sm:$0xff] }
  0x1b   : > { %627 = vperm.xlu0 %1136, %v610_v20   ;;  %v1358_v24 = vld [vmem:[%s1522_s4] ss:$0 sm:$0xff]  ;;  %v616_v41 = vld [vmem:[%s1351_s19 + $0x30] sm:$0xff]  ;;  %v617_v49 = vld [vmem:[%s1351_s19 + $0x38] sm:$0xff] }
  0x1c   : > { %424 = vmatpush.bf16.msra.mxu0 %v1072_v2  ;;  %1085 = vmatpush.bf16.msra.mxu3 %v1072_v2  ;;  %v614_v48 = vld [vmem:[%s1351_s19 + $0x20] sm:$0xff]  ;;  %v619_v50 = vld [vmem:[%s1351_s19 + $0x48] sm:$0xff]  ;;  %v620_v53 = vld [vmem:[%s1351_s19 + $0x50] sm:$0xff] }
  0x1d   : > { %561 = vmatpush.bf16.msra.mxu1 %v1080_v10  ;;  %1089 = vmatpush.bf16.msra.mxu2 %v1080_v10  ;;  %v615_v52 = vld [vmem:[%s1351_s19 + $0x28] sm:$0xff]  ;;  %v622_v54 = vld [vmem:[%s1351_s19 + $0x60] sm:$0xff]  ;;  %v625_v62 = vld [vmem:[%s1351_s19 + $0x78] sm:$0xff] }
  0x1e   : > { %639 = vperm.xlu2 %1138, %v614_v48   ;;  %v618_v61 = vld [vmem:[%s1351_s19 + $0x40] sm:$0xff]  ;;  %v623_v63 = vld [vmem:[%s1351_s19 + $0x68] sm:$0xff]  ;;  %v621_v2 = vld [vmem:[%s1351_s19 + $0x58] sm:$0xff] }
  0x1f   : > { %v624_v10 = vld [vmem:[%s1351_s19 + $0x70] sm:$0xff]  ;;  %s1156_s19 = sshra.s32 %s883_s18, 4  ;;  %s1157_s19 = int_to_ptr.hbm [resolvable:$true] %s1156_s19 }
  0x20   : > { %425 = vmatpush.bf16.msra.mxu0 %v1071_v3  ;;  %1086 = vmatpush.bf16.msra.mxu3 %v1071_v3  ;;  %s1158_s20 = scalar_lea.hbm %s1157_s19, 1  ;;  %p1163_p0 = scmp.lt.s32.totalorder %s1157_s19, %s1525_s7 }
  0x21   : > { %562 = vmatpush.bf16.msra.mxu1 %v1079_v12  ;;  %1090 = vmatpush.bf16.msra.mxu2 %v1079_v12  ;;  %p1159_p11 = scmp.ne.s32.totalorder %s1157_s19, %s1158_s20  ;;  %p1164_p1 = scmp.lt.s32.totalorder %s1162_s22, %s1158_s20 }
  0x22   : > { %636 = vperm.xlu1 %1137, %v613_v32  }
  0x23   : > { %1005 = vmatmul.msk.bf16.vlgmr.msra.gmra.mxu0 %vm393_vm0, %v1063_v4  ;;  %1010 = vmatmul.msk.bf16.vlgmr.msra.gmra.mxu3 %vm393_vm0, %v1068_v7  ;;  %p1160_p12 = pnand %p1159_p11, %p1286_p5  ;;  %p1165_p2 = por %p1164_p1, %p1163_p0 }
  0x24   : > { %630 = vperm.xlu0 %1136, %v611_v22  }
  0x25   : > { %563 = vmatpush.bf16.msra.mxu1 %v1078_v16  ;;  %1091 = vmatpush.bf16.msra.mxu2 %v1078_v16  ;;  %p1161_p13 = pneg %p1160_p12 }
  0x26   : > { %642 = vperm.xlu2 %1138, %v615_v52  }
  0x27   : > { %p1166_p3 = pnand %p1165_p2, %p1161_p13 }
  0x29   : > { %564 = vmatpush.bf16.msra.mxu1 %v1077_v17  ;;  %1092 = vmatpush.bf16.msra.mxu2 %v1077_v17 }
  0x2a   : > { %648 = vperm.xlu1 %1137, %v617_v49  }
  0x2c   : > { %645 = vperm.xlu0 %1136, %v616_v41  }
  0x2d   : > { %565 = vmatpush.bf16.msra.mxu1 %v1076_v18  ;;  %1093 = vmatpush.bf16.msra.mxu2 %v1076_v18 }
  0x2e   : > { %651 = vperm.xlu2 %1138, %v618_v61  }
  0x31   : > { %566 = vmatpush.bf16.msra.mxu1 %v1075_v19  ;;  %1094 = vmatpush.bf16.msra.mxu2 %v1075_v19 }
  0x32   : > { %657 = vperm.xlu1 %1137, %v620_v53  }
  0x33   : > { %1006 = vmatmul.msk.bf16.gmra.mxu0 %vm393_vm0, %v1064_v5  ;;  %1011 = vmatmul.msk.bf16.gmra.mxu3 %vm393_vm0, %v1069_v13 }
  0x34   : > { %654 = vperm.xlu0 %1136, %v619_v50  }
  0x36   : > { %660 = vperm.xlu2 %1138, %v621_v2  }
  0x3a   : > { %666 = vperm.xlu1 %1137, %v623_v63  }
  0x3c   : > { %663 = vperm.xlu0 %1136, %v622_v54  }
  0x3e   : > { %669 = vperm.xlu2 %1138, %v624_v10  }
  0x43   : > { %1007 = vmatmul.msk.bf16.gmra.mxu0 %vm393_vm0, %v1065_v6  ;;  %1012 = vmatmul.msk.bf16.gmra.mxu3 %vm393_vm0, %v1070_v15 }
  0x44   : > { %672 = vperm.xlu0 %1136, %v625_v62  }
  0x53   : > { %1008 = vmatmul.msk.bf16.gmra.mxu0 %vm393_vm0, %v1066_v11 }
  0x63   : > { %1009 = vmatmul.msk.bf16.gmra.mxu0 %vm393_vm0, %v1067_v14 }
  0x8d   : > { %v628_v32 = vpop.permute.xlu0 %627 }
  0xa0   : > { %v427_v23 = vpop.f32.mrf.mxu0 }
  0xa1   : > { %v428_v26 = vadd.f32 %v1358_v24, %v427_v23 }
  0xa3   : > { %v467_v29 = vmax.f32 %v428_v26, 0.0 }
  0xa6   : > { %v452_v1 = vpop.f32.mrf.mxu3 }
  0xa7   : > { %v453_v12 = vadd.f32 %v1358_v24, %v452_v1 }
  0xa8   : > { %v429_v27 = vpop.f32.mrf.mxu0 }
  0xa9   : > { %v430_v28 = vadd.f32 %v1358_v24, %v429_v27  ;;  %v477_v14 = vmax.f32 %v453_v12, 0.0 }
  0xab   : > { %v468_v30 = vmax.f32 %v430_v28, 0.0 }
  0xad   : > { %v483_v31 = vpack.c.bf16 %v468_v30, %v467_v29 }
  0xae   : > { %v454_v6 = vpop.f32.mrf.mxu3 }
  0xaf   : > { %567 = vmatmul.bf16.vlgmr.msra.gmra.mxu1 %v483_v31  ;;  %v455_v13 = vadd.f32 %v1358_v24, %v454_v6  ;;  %v608_v31 = vlaneseq }
  0xb0   : > { %v432_v33 = vpop.f32.mrf.mxu0 }
  0xb1   : > { %v433_v34 = vadd.f32 %v1358_v24, %v432_v33  ;;  %v478_v15 = vmax.f32 %v455_v13, 0.0  ;;  %v1390_v33 = vand.u32 127, %v608_v31 }
  0xb3   : > { %v469_v37 = vmax.f32 %v433_v34, 0.0  ;;  %v488_v16 = vpack.c.bf16 %v478_v15, %v477_v14  ;;  %vm674_vm1 = vcmp.eq.s32.totalorder %v1390_v33, %v628_v32  ;;  %v1396_v34 = vld [vmem:[%s1520_s2] ss:$0 sm:$0xff] }
  0xb6   : > { %v457_v11 = vpop.f32.mrf.mxu3 }
  0xb7   : > { %v458_v18 = vadd.f32 %v1358_v24, %v457_v11 }
  0xb8   : > { %v434_v35 = vpop.f32.mrf.mxu0 }
  0xb9   : > { %v435_v36 = vadd.f32 %v1358_v24, %v434_v35  ;;  %v479_v21 = vmax.f32 %v458_v18, 0.0  ;;  %v1207_v35 = vmov 0.0  }
  0xbb   : > { %v470_v38 = vmax.f32 %v435_v36, 0.0  ;;  %v1045_v36 = vsel %vm674_vm1, 1.0, %v1207_v35  ;;  %vm809_vm1 = vcmask 130112  }
  0xbd   : > { %v484_v39 = vpack.c.bf16 %v470_v38, %v469_v37  ;;  %v631_v37 = vpop.permute.xlu0 %630  ;;  %v726_v38 = vsub.f32 %v1045_v36, %v1396_v34 }
  0xbe   : > { %v459_v17 = vpop.f32.mrf.mxu3  ;;  %vm675_vm2 = vcmp.eq.s32.totalorder %v1390_v33, %v631_v37 }
  0xbf   : > { %572 = vmatmul.bf16.gmra.mxu1 %v484_v39  ;;  %v460_v19 = vadd.f32 %v1358_v24, %v459_v17 }
  0xc0   : > { %v437_v40 = vpop.f32.mrf.mxu0 }
  0xc1   : > { %v438_v42 = vadd.f32 %v1358_v24, %v437_v40  ;;  %v480_v22 = vmax.f32 %v460_v19, 0.0 }
  0xc3   : > { %v471_v45 = vmax.f32 %v438_v42, 0.0  ;;  %v489_v23 = vpack.c.bf16 %v480_v22, %v479_v21  ;;  %v1046_v42 = vsel %vm675_vm2, 1.0, %v1207_v35  ;;  %vm813_vm2 = vcmask 195712  }
  0xc6   : > { %v462_v20 = vpop.f32.mrf.mxu3 }
  0xc7   : > { %v463_v26 = vadd.f32 %v1358_v24, %v462_v20 }
  0xc8   : > { %v439_v43 = vpop.f32.mrf.mxu0 }
  0xc9   : > { %v440_v44 = vadd.f32 %v1358_v24, %v439_v43  ;;  %v481_v28 = vmax.f32 %v463_v26, 0.0  ;;  %v634_v43 = vpop.permute.xlu1 %633 }
  0xca   : > { %vm676_vm3 = vcmp.eq.s32.totalorder %v1390_v33, %v634_v43 }
  0xcb   : > { %v472_v46 = vmax.f32 %v440_v44, 0.0  ;;  %v727_v44 = vsub.f32 %v1046_v42, %v1396_v34  ;;  %v1047_v48 = vsel %vm676_vm3, 1.0, %v1207_v35  ;;  %vm817_vm3 = vcmask 261312  }
  0xcc   : > { %v728_v50 = vsub.f32 %v1047_v48, %v1396_v34 }
  0xcd   : > { %v485_v47 = vpack.c.bf16 %v472_v46, %v471_v45 }
  0xce   : > { %v464_v25 = vpop.f32.mrf.mxu3 }
  0xcf   : > { %577 = vmatmul.bf16.gmra.mxu1 %v485_v47  ;;  %v465_v27 = vadd.f32 %v1358_v24, %v464_v25 }
  0xd0   : > { %v442_v51 = vpop.f32.mrf.mxu0 }
  0xd1   : > { %v443_v55 = vadd.f32 %v1358_v24, %v442_v51  ;;  %v482_v29 = vmax.f32 %v465_v27, 0.0  ;;  %v637_v49 = vpop.permute.xlu1 %636 }
  0xd2   : > { %vm677_vm4 = vcmp.eq.s32.totalorder %v1390_v33, %v637_v49 }
  0xd3   : > { %v473_v58 = vmax.f32 %v443_v55, 0.0  ;;  %v490_v30 = vpack.c.bf16 %v482_v29, %v481_v28  ;;  %v1048_v54 = vsel %vm677_vm4, 1.0, %v1207_v35  ;;  %v640_v55 = vpop.permute.xlu2 %639  ;;  %vm821_vm4 = vcmask 326912  }
  0xd4   : > { %vm678_vm5 = vcmp.eq.s32.totalorder %v1390_v33, %v640_v55 }
  0xd8   : > { %v444_v56 = vpop.f32.mrf.mxu0 }
  0xd9   : > { %v445_v57 = vadd.f32 %v1358_v24, %v444_v56  ;;  %v729_v56 = vsub.f32 %v1048_v54, %v1396_v34 }
  0xdb   : > { %v474_v59 = vmax.f32 %v445_v57, 0.0  ;;  %v643_v61 = vpop.permute.xlu2 %642 }
  0xdc   : > { %vm679_vm6 = vcmp.eq.s32.totalorder %v1390_v33, %v643_v61 }
  0xdd   : > { %v486_v60 = vpack.c.bf16 %v474_v59, %v473_v58  ;;  %v1050_v2 = vsel %vm679_vm6, 1.0, %v1207_v35  ;;  %vm829_vm6 = vcmask 458112  }
  0xdf   : > { %582 = vmatmul.bf16.gmra.mxu1 %v486_v60  ;;  %v1049_v60 = vsel %vm678_vm5, 1.0, %v1207_v35  ;;  %vm825_vm5 = vcmask 392512  }
  0xe0   : > { %v447_v0 = vpop.f32.mrf.mxu0  ;;  %v730_v62 = vsub.f32 %v1049_v60, %v1396_v34 }
  0xe1   : > { %v448_v3 = vadd.f32 %v1358_v24, %v447_v0 }
  0xe3   : > { %v475_v7 = vmax.f32 %v448_v3, 0.0  ;;  %v646_v3 = vpop.permute.xlu0 %645  ;;  %v652_v19 = vpop.permute.xlu2 %651 }
  0xe4   : > { %vm680_vm7 = vcmp.eq.s32.totalorder %v1390_v33, %v646_v3  ;;  %vm682_vm9 = vcmp.eq.s32.totalorder %v1390_v33, %v652_v19  ;;  %v823_v19 = vadd.s32 4294967256, %v1390_v33 }
  0xe5   : > { %v1053_v20 = vsel %vm682_vm9, 1.0, %v1207_v35  ;;  %vm841_vm9 = vcmask 654912  }
  0xe6   : > { %v734_v21 = vsub.f32 %v1053_v20, %v1396_v34 }
  0xe8   : > { %v449_v4 = vpop.f32.mrf.mxu0 }
  0xe9   : > { %v450_v5 = vadd.f32 %v1358_v24, %v449_v4  ;;  %v1402_v24 = vld [vmem:[%s1524_s6] ss:$0 sm:$0xff]  ;;  %v731_v4 = vsub.f32 %v1050_v2, %v1396_v34 }
  0xeb   : > { %v476_v8 = vmax.f32 %v450_v5, 0.0  ;;  %v655_v22 = vpop.permute.xlu0 %654 }
  0xec   : > { %vm683_vm10 = vcmp.eq.s32.totalorder %v1390_v33, %v655_v22 }
  0xed   : > { %v487_v9 = vpack.c.bf16 %v476_v8, %v475_v7  ;;  %v1051_v8 = vsel %vm680_vm7, 1.0, %v1207_v35  ;;  %v1054_v27 = vsel %vm683_vm10, 1.0, %v1207_v35  ;;  %vm833_vm7 = vcmask 523712  }
  0xee   : > { %v732_v10 = vsub.f32 %v1051_v8, %v1396_v34  ;;  %v735_v28 = vsub.f32 %v1054_v27, %v1396_v34  ;;  %vm845_vm10 = vcmask 720512  }
  0xef   : > { %587 = vmatmul.bf16.vlgmr.msra.gmra.mxu2 %v487_v9  ;;  %v649_v9 = vpop.permute.xlu1 %648 }
  0xf0   : > { %vm681_vm8 = vcmp.eq.s32.totalorder %v1390_v33, %v649_v9 }
  0xf1   : > { %v1052_v14 = vsel %vm681_vm8, 1.0, %v1207_v35  ;;  %vm837_vm8 = vcmask 589312  }
  0xf2   : > { %v733_v15 = vsub.f32 %v1052_v14, %v1396_v34 }
  0xf7   : > { %v658_v29 = vpop.permute.xlu1 %657 }
  0xf8   : > { %vm684_vm11 = vcmp.eq.s32.totalorder %v1390_v33, %v658_v29  ;;  %v835_v29 = vadd.s32 4294967232, %v1390_v33 }
  0xf9   : > { %v1055_v36 = vsel %vm684_vm11, 1.0, %v1207_v35  ;;  %vm849_vm11 = vcmask 786112  }
  0xfa   : > { %v736_v37 = vsub.f32 %v1055_v36, %v1396_v34 }
  0xff   : > { %592 = vmatmul.bf16.gmra.mxu2 %v488_v16  ;;  %v667_v49 = vpop.permute.xlu1 %666 }
 0x100   : > { %vm687_vm14 = vcmp.eq.s32.totalorder %v1390_v33, %v667_v49 }
 0x101   : > { %v1058_v54 = vsel %vm687_vm14, 1.0, %v1207_v35  ;;  %vm861_vm14 = vcmask 982912  }
 0x10f   : > { %597 = vmatmul.bf16.gmra.mxu2 %v489_v23 }
 0x11f   : > { %602 = vmatmul.bf16.gmra.mxu2 %v490_v30 }
 0x12c   : > { %v568_v39 = vpop.f32.mrf.mxu1 }
 0x12d   : > { %v569_v40 = vadd.f32 %v1402_v24, %v568_v39 }
 0x12f   : > { %v742_v41 = vmul.f32 %v726_v38, %v569_v40  ;;  %v661_v38 = vpop.permute.xlu2 %660 }
 0x130   : > { %vm685_vm12 = vcmp.eq.s32.totalorder %v1390_v33, %v661_v38  ;;  %v843_v38 = vadd.s32 4294967216, %v1390_v33 }
 0x131   : > { %758 = vadd.xlane.f32.xlu1 %v742_v41  ;;  %v1056_v42 = vsel %vm685_vm12, 1.0, %v1207_v35  ;;  %vm853_vm12 = vcmask 851712  }
 0x132   : > { %v737_v43 = vsub.f32 %v1056_v42, %v1396_v34 }
 0x134   : > { %v570_v45 = vpop.f32.mrf.mxu1 }
 0x135   : > { %v571_v46 = vadd.f32 %v1402_v24, %v570_v45 }
 0x137   : > { %v743_v47 = vmul.f32 %v727_v44, %v571_v46  ;;  %v664_v46 = vpop.permute.xlu0 %663  ;;  %v670_v55 = vpop.permute.xlu2 %669 }
 0x138   : > { %vm686_vm13 = vcmp.eq.s32.totalorder %v1390_v33, %v664_v46  ;;  %vm688_vm15 = vcmp.eq.s32.totalorder %v1390_v33, %v670_v55 }
 0x139   : > { %760 = vadd.xlane.f32.xlu2 %v743_v47  ;;  %v1057_v48 = vsel %vm686_vm13, 1.0, %v1207_v35  ;;  %v1059_v60 = vsel %vm688_vm15, 1.0, %v1207_v35  ;;  %vm857_vm13 = vcmask 917312   ;;  %vm865_vm15 = vcmask 1048512  }
 0x13c   : > { %v573_v51 = vpop.f32.mrf.mxu1 }
 0x13d   : > { %v574_v52 = vadd.f32 %v1402_v24, %v573_v51  ;;  %v738_v51 = vsub.f32 %v1057_v48, %v1396_v34  ;;  %v855_v48 = vadd.s32 4294967192, %v1390_v33 }
 0x13f   : > { %v744_v53 = vmul.f32 %v728_v50, %v574_v52  ;;  %v673_v61 = vpop.permute.xlu0 %672 }
 0x140   : > { %vm689_vm0 = vcmp.eq.s32.totalorder %v1390_v33, %v673_v61 }
 0x141   : > { %762 = vadd.xlane.f32.xlu0 %v744_v53  ;;  %v1060_v2 = vsel %vm689_vm0, 1.0, %v1207_v35  ;;  %v811_v35 = vadd.s32 4294967280, %v1390_v33 }
 0x144   : > { %v575_v57 = vpop.f32.mrf.mxu1 }
 0x145   : > { %v576_v58 = vadd.f32 %v1402_v24, %v575_v57  ;;  %v739_v57 = vsub.f32 %v1058_v54, %v1396_v34 }
 0x147   : > { %v745_v59 = vmul.f32 %v729_v56, %v576_v58 }
 0x149   : > { %764 = vadd.xlane.f32.xlu2 %v745_v59 }
 0x14c   : > { %v578_v63 = vpop.f32.mrf.mxu1 }
 0x14d   : > { %v579_v0 = vadd.f32 %v1402_v24, %v578_v63  ;;  %v740_v63 = vsub.f32 %v1059_v60, %v1396_v34  ;;  %v863_v60 = vadd.s32 4294967176, %v1390_v33 }
 0x14f   : > { %v746_v1 = vmul.f32 %v730_v62, %v579_v0 }
 0x151   : > { %766 = vadd.xlane.f32.xlu1 %v746_v1 }
 0x154   : > { %v580_v5 = vpop.f32.mrf.mxu1 }
 0x155   : > { %v581_v6 = vadd.f32 %v1402_v24, %v580_v5 }
 0x157   : > { %v747_v7 = vmul.f32 %v731_v4, %v581_v6  ;;  %v741_v4 = vsub.f32 %v1060_v2, %v1396_v34  ;;  %v819_v34 = vadd.s32 4294967264, %v1390_v33 }
 0x159   : > { %768 = vadd.xlane.f32.xlu2 %v747_v7 }
 0x15c   : > { %v583_v11 = vpop.f32.mrf.mxu1 }
 0x15d   : > { %v584_v12 = vadd.f32 %v1402_v24, %v583_v11 }
 0x15f   : > { %v748_v13 = vmul.f32 %v732_v10, %v584_v12 }
 0x161   : > { %770 = vadd.xlane.f32.xlu0 %v748_v13 }
 0x164   : > { %v585_v16 = vpop.f32.mrf.mxu1 }
 0x165   : > { %v586_v17 = vadd.f32 %v1402_v24, %v585_v16  ;;  %v807_v16 = vadd.s32 4294967288, %v1390_v33 }
 0x167   : > { %v749_v18 = vmul.f32 %v733_v15, %v586_v17  ;;  %v815_v17 = vadd.s32 4294967272, %v1390_v33 }
 0x169   : > { %772 = vadd.xlane.f32.xlu1 %v749_v18 }
 0x172   : > { %v588_v23 = vpop.f32.mrf.mxu2 }
 0x173   : > { %v589_v25 = vadd.f32 %v1402_v24, %v588_v23 }
 0x175   : > { %v750_v26 = vmul.f32 %v734_v21, %v589_v25  ;;  %v827_v21 = vadd.s32 4294967248, %v1390_v33 }
 0x177   : > { %774 = vadd.xlane.f32.xlu2 %v750_v26  ;;  %v831_v26 = vadd.s32 4294967240, %v1390_v33 }
 0x17a   : > { %v590_v30 = vpop.f32.mrf.mxu2 }
 0x17b   : > { %v591_v31 = vadd.f32 %v1402_v24, %v590_v30 }
 0x17d   : > { %v751_v32 = vmul.f32 %v735_v28, %v591_v31 }
 0x17f   : > { %776 = vadd.xlane.f32.xlu0 %v751_v32  ;;  %v839_v32 = vadd.s32 4294967224, %v1390_v33 }
 0x182   : > { %v593_v39 = vpop.f32.mrf.mxu2 }
 0x183   : > { %v594_v40 = vadd.f32 %v1402_v24, %v593_v39 }
 0x185   : > { %v752_v41 = vmul.f32 %v736_v37, %v594_v40 }
 0x187   : > { %778 = vadd.xlane.f32.xlu1 %v752_v41  ;;  %v847_v41 = vadd.s32 4294967208, %v1390_v33 }
 0x18a   : > { %v595_v44 = vpop.f32.mrf.mxu2 }
 0x18b   : > { %v596_v45 = vadd.f32 %v1402_v24, %v595_v44  ;;  %v851_v44 = vadd.s32 4294967200, %v1390_v33 }
 0x18d   : > { %v753_v47 = vmul.f32 %v737_v43, %v596_v45 }
 0x18f   : > { %780 = vadd.xlane.f32.xlu2 %v753_v47 }
 0x192   : > { %v598_v50 = vpop.f32.mrf.mxu2 }
 0x193   : > { %v599_v52 = vadd.f32 %v1402_v24, %v598_v50 }
 0x195   : > { %v754_v53 = vmul.f32 %v738_v51, %v599_v52  ;;  %v859_v52 = vadd.s32 4294967184, %v1390_v33 }
 0x197   : > { %782 = vadd.xlane.f32.xlu0 %v754_v53 }
 0x19a   : > { %v600_v56 = vpop.f32.mrf.mxu2 }
 0x19b   : > { %v601_v58 = vadd.f32 %v1402_v24, %v600_v56 }
 0x19d   : > { %v755_v59 = vmul.f32 %v739_v57, %v601_v58 }
 0x19f   : > { %784 = vadd.xlane.f32.xlu1 %v755_v59 }
 0x1a2   : > { %v603_v62 = vpop.f32.mrf.mxu2 }
 0x1a3   : > { %v604_v0 = vadd.f32 %v1402_v24, %v603_v62 }
 0x1a4   : > { %v759_v8 = vpop.xlane.xlu1 %758 }
 0x1a5   : > { %v756_v1 = vmul.f32 %v740_v63, %v604_v0  ;;  %v806_v23 = vperm.slane %v759_v8, %v1390_v33 }
 0x1a7   : > { %786 = vadd.xlane.f32.xlu2 %v756_v1 }
 0x1aa   : > { %v605_v3 = vpop.f32.mrf.mxu2 }
 0x1ab   : > { %v606_v5 = vadd.f32 %v1402_v24, %v605_v3 }
 0x1ac   : > { %v761_v7 = vpop.xlane.xlu2 %760 }
 0x1ad   : > { %v757_v6 = vmul.f32 %v741_v4, %v606_v5  ;;  %v808_v18 = vperm.slane %v761_v7, %v807_v16 }
 0x1af   : > { %788 = vadd.xlane.f32.xlu0 %v757_v6  ;;  %v810_v30 = vsel %vm809_vm1, %v808_v18, %v806_v23 }
 0x1b4   : > { %v763_v10 = vpop.xlane.xlu0 %762 }
 0x1b5   : > { %v812_v20 = vperm.slane %v763_v10, %v811_v35 }
 0x1b7   : > { %v814_v36 = vsel %vm813_vm2, %v812_v20, %v810_v30 }
 0x1bc   : > { %v765_v9 = vpop.xlane.xlu2 %764 }
 0x1bd   : > { %v816_v25 = vperm.slane %v765_v9, %v815_v17 }
 0x1bf   : > { %v818_v39 = vsel %vm817_vm3, %v816_v25, %v814_v36 }
 0x1c4   : > { %v767_v11 = vpop.xlane.xlu1 %766 }
 0x1c5   : > { %v820_v28 = vperm.slane %v767_v11, %v819_v34 }
 0x1c7   : > { %v822_v42 = vsel %vm821_vm4, %v820_v28, %v818_v39 }
 0x1cc   : > { %v769_v12 = vpop.xlane.xlu2 %768 }
 0x1cd   : > { %v824_v31 = vperm.slane %v769_v12, %v823_v19 }
 0x1cf   : > { %v826_v46 = vsel %vm825_vm5, %v824_v31, %v822_v42 }
 0x1d4   : > { %v771_v13 = vpop.xlane.xlu0 %770 }
 0x1d5   : > { %v828_v37 = vperm.slane %v771_v13, %v827_v21 }
 0x1d7   : > { %v830_v49 = vsel %vm829_vm6, %v828_v37, %v826_v46 }
 0x1dc   : > { %v773_v14 = vpop.xlane.xlu1 %772 }
 0x1dd   : > { %v832_v40 = vperm.slane %v773_v14, %v831_v26 }
 0x1df   : > { %v834_v53 = vsel %vm833_vm7, %v832_v40, %v830_v49 }
 0x1ea   : > { %v775_v15 = vpop.xlane.xlu2 %774 }
 0x1eb   : > { %v836_v43 = vperm.slane %v775_v15, %v835_v29 }
 0x1ed   : > { %v838_v56 = vsel %vm837_vm8, %v836_v43, %v834_v53 }
 0x1f2   : > { %v777_v24 = vpop.xlane.xlu0 %776 }
 0x1f3   : > { %v840_v47 = vperm.slane %v777_v24, %v839_v32 }
 0x1f5   : > { %v842_v58 = vsel %vm841_vm9, %v840_v47, %v838_v56 }
 0x1fa   : > { %v779_v22 = vpop.xlane.xlu1 %778 }
 0x1fb   : > { %v844_v50 = vperm.slane %v779_v22, %v843_v38 }
 0x1fd   : > { %v846_v61 = vsel %vm845_vm10, %v844_v50, %v842_v58 }
 0x202   : > { %v781_v27 = vpop.xlane.xlu2 %780 }
 0x203   : > { %v848_v54 = vperm.slane %v781_v27, %v847_v41 }
 0x205   : > { %v850_v63 = vsel %vm849_vm11, %v848_v54, %v846_v61 }
 0x20a   : > { %v783_v45 = vpop.xlane.xlu0 %782 }
 0x20b   : > { %v852_v57 = vperm.slane %v783_v45, %v851_v44 }
 0x20d   : > { %v854_v0 = vsel %vm853_vm12, %v852_v57, %v850_v63 }
 0x212   : > { %v785_v51 = vpop.xlane.xlu1 %784 }
 0x213   : > { %v856_v59 = vperm.slane %v785_v51, %v855_v48 }
 0x215   : > { %v858_v2 = vsel %vm857_vm13, %v856_v59, %v854_v0 }
 0x21a   : > { %v787_v55 = vpop.xlane.xlu2 %786 }
 0x21b   : > { %v860_v62 = vperm.slane %v787_v55, %v859_v52 }
 0x21d   : > { %v862_v4 = vsel %vm861_vm14, %v860_v62, %v858_v2 }
 0x222   : > { %v789_v1 = vpop.xlane.xlu0 %788 }
 0x223   : > { %v864_v3 = vperm.slane %v789_v1, %v863_v60 }
 0x225   : > { %v866_v33 = vsel %vm865_vm15, %v864_v3, %v862_v4 }
 0x226   : > { %868 = vst [vmem:[%s287_s16] sm:$0x1] %v866_v33 }
 0x227   : > { %1169 = shalt.err (!%p1166_p3)
}
 0x228   : > { %1095 = dma.vmem_to_hbm [thread:$0]  (%p1286_p5), %s881_s17, 16, %s883_s18, %s870_s28  }
 0x229 PF: > { %p1101_p4 = scmp.ge.s32.totalorder %s1204_s27, 2  ;;  %s894_s9 = sand.u32 1, %s1192_s24  }
 0x22a   : > { %s895_s13 = scalar_lea.sflag [#allocation3], %s894_s9 }
 0x22b   : > { %p1098_p7 = pnand %p1101_p4, %p1290_p6 }
 0x22d   : > { %p1099_p8 = pneg %p1098_p7 }
 0x22f   : > { %1187 = dma.done.wait (%p1099_p8), %s895_s13, 16  }
 0x230   : > { %1189 = vsyncadd (%p1099_p8), %s895_s13, 4294967280  ;;  %p17_p9 = scmp.ge.s32.totalorder %s1273_s30, 4   ;;  %s1528_s24 = smov %s1196_s25 }
 0x231   : > { %s1529_s25 = smov %s1200_s26  ;;  %s1530_s26 = smov %s1284_s10 }
 0x232   : > { %s1531_s27 = smov %s1273_s30  ;;  %19 = sbr.rel (!%p17_p9) target bundleno = 3 (0x3), region = 86 }
 0x237   :  { %900 = vsyncpa [#allocation3], 1 }
 0x238   :  { %902 = vsyncpa [#allocation3 + $0x1], 1 }

</bundles_post_ra>
